<compile_context>
chip_gen: v7x
topology: tpu7x:2x2x1
jax: 0.10.0
libtpu: 0.0.40
codegen_flags: <defaults>
</compile_context>

<pallas_src>
import functools

import jax
import jax.numpy as jnp
from jax.experimental import pallas as pl
from jax.experimental.pallas import tpu as pltpu


def _rmsnorm_kernel_general(x_ref, scale_ref, o_ref, *, eps, inv_dim):
    # x_ref: (row_tile, dim)  scale_ref: (1, dim) f32  o_ref: (row_tile, dim)
    x = x_ref[...].astype(jnp.float32)
    ms = jnp.sum(x * x, axis=-1, keepdims=True) * inv_dim      # (row_tile, 1)
    inv = jax.lax.rsqrt(ms + eps)                               # EUP rsqrt
    o_ref[...] = (x * inv * scale_ref[...]).astype(o_ref.dtype)


def _rmsnorm_kernel_packed(x_ref, scale_ref, gmat_ref, o_ref, *, eps):
    # x_ref: (row_tile, 128) holding g=128/dim logical rows per lane-row.
    # gmat_ref: (128, 128) block-diagonal matrix with 1/dim inside each
    #           dim-wide group -> per-group mean(x^2) broadcast over the group.
    x = x_ref[...].astype(jnp.float32)
    ms = jnp.dot(
        x * x,
        gmat_ref[...],
        precision=jax.lax.Precision.HIGHEST,
        preferred_element_type=jnp.float32,
    )
    inv = jax.lax.rsqrt(ms + eps)
    o_ref[...] = (x * inv * scale_ref[...]).astype(o_ref.dtype)


def rmsnorm_pallas(x, scale, eps=1e-8, target_block_bytes=2 * 1024 * 1024):
    """RMSNorm over the last axis: x / sqrt(mean(x^2, -1) + eps) * scale."""
    orig_shape = x.shape
    dim = orig_shape[-1]
    assert scale.shape == (dim,)

    rows = 1
    for d in orig_shape[:-1]:
        rows *= d

    scale_f32 = scale.astype(jnp.float32)

    # Lane packing factor: pack g logical rows per 128-lane vreg row when possible.
    if dim < 128 and 128 % dim == 0:
        g = 128 // dim
    else:
        g = 1
    lane_width = g * dim

    itemsize = jnp.dtype(x.dtype).itemsize
    row_bytes = lane_width * itemsize
    packed_rows = pl.cdiv(rows, g)

    # Largest row tile that keeps (in + out) x double-buffering comfortably in
    # VMEM; multiple of 16 sublanes (f32 & bf16 friendly), capped by data size.
    row_tile = max(16, (target_block_bytes // row_bytes) // 16 * 16)
    row_tile = min(row_tile, pl.cdiv(packed_rows, 16) * 16)

    padded_packed_rows = pl.cdiv(packed_rows, row_tile) * row_tile
    padded_rows = padded_packed_rows * g

    x2d = x.reshape(rows, dim)
    if padded_rows != rows:
        x2d = jnp.pad(x2d, ((0, padded_rows - rows), (0, 0)))
    x_packed = x2d.reshape(padded_packed_rows, lane_width)

    grid = (padded_packed_rows // row_tile,)

    if g > 1:
        scale_in = jnp.tile(scale_f32, g).reshape(1, lane_width)
        lane_ids = jnp.arange(lane_width, dtype=jnp.int32)
        group = lane_ids // dim
        gmat = jnp.where(
            group[:, None] == group[None, :],
            jnp.float32(1.0 / dim),
            jnp.float32(0.0),
        )
        kernel = functools.partial(_rmsnorm_kernel_packed, eps=eps)
        in_specs = [
            pl.BlockSpec((row_tile, lane_width), lambda i: (i, 0)),
            pl.BlockSpec((1, lane_width), lambda i: (0, 0)),
            pl.BlockSpec((lane_width, lane_width), lambda i: (0, 0)),
        ]
        args = (x_packed, scale_in, gmat)
    else:
        scale_in = scale_f32.reshape(1, lane_width)
        kernel = functools.partial(
            _rmsnorm_kernel_general, eps=eps, inv_dim=1.0 / dim
        )
        in_specs = [
            pl.BlockSpec((row_tile, lane_width), lambda i: (i, 0)),
            pl.BlockSpec((1, lane_width), lambda i: (0, 0)),
        ]
        args = (x_packed, scale_in)

    out_packed = pl.pallas_call(
        kernel,
        out_shape=jax.ShapeDtypeStruct((padded_packed_rows, lane_width), x.dtype),
        grid_spec=pl.GridSpec(
            grid=grid,
            in_specs=in_specs,
            out_specs=pl.BlockSpec((row_tile, lane_width), lambda i: (i, 0)),
        ),
        compiler_params=pltpu.CompilerParams(
            dimension_semantics=("parallel",),
            vmem_limit_bytes=32 * 1024 * 1024,
        ),
    )(*args)

    out2d = out_packed.reshape(padded_rows, dim)
    if padded_rows != rows:
        out2d = out2d[:rows]
    return out2d.reshape(orig_shape)


def rmsnorm_ref(x, scale, eps=1e-8):
    xf = x.astype(jnp.float32)
    rms = jnp.sqrt(jnp.mean(xf * xf, axis=-1, keepdims=True) + eps)
    return (xf / rms * scale.astype(jnp.float32)).astype(x.dtype)


if __name__ == "__main__":
    key = jax.random.PRNGKey(0)

    # Shapes consistent with the module usage: (batch=2, seq=8, dim=32).
    batch, seq, dim = 2, 8, 32
    k1, k2, k3 = jax.random.split(key, 3)
    x = jax.random.normal(k1, (batch, seq, dim), dtype=jnp.float32)

    # Deterministic parameter init: nn.Parameter(torch.ones(dim)).
    scale = jnp.ones((dim,), dtype=jnp.float32)

    out = rmsnorm_pallas(x, scale, eps=1e-8)          # lane-packed (dim | 128) path
    out = jax.block_until_ready(out)
    expected = rmsnorm_ref(x, scale, eps=1e-8)
    assert out.shape == x.shape
    assert jnp.allclose(out, expected, atol=1e-5, rtol=1e-5), "mismatch (packed path)"

    # Exercise a non-trivial scale on the same path.
    scale2 = jax.random.normal(k2, (dim,), dtype=jnp.float32)
    out2 = jax.block_until_ready(rmsnorm_pallas(x, scale2, eps=1e-8))
    exp2 = rmsnorm_ref(x, scale2, eps=1e-8)
    assert jnp.allclose(out2, exp2, atol=1e-5, rtol=1e-5), "mismatch (packed, scale)"

    # Exercise the general (dim >= 128) path at a small shape.
    dim_big = 256
    xb = jax.random.normal(k3, (batch, seq, dim_big), dtype=jnp.float32)
    scaleb = jnp.ones((dim_big,), dtype=jnp.float32)
    outb = jax.block_until_ready(rmsnorm_pallas(xb, scaleb, eps=1e-8))
    expb = rmsnorm_ref(xb, scaleb, eps=1e-8)
    assert outb.shape == xb.shape
    assert jnp.allclose(outb, expb, atol=1e-5, rtol=1e-5), "mismatch (general path)"

    print("KERNEL_OK")
</pallas_src>

<mosaic_0001>
module attributes {stable_mosaic.version = 11 : i64} {
  func.func @_rmsnorm_kernel_packed(%arg0: i32, %arg1: memref<16x128xf32, #tpu.memory_space<vmem>>, %arg2: memref<1x128xf32, #tpu.memory_space<vmem>>, %arg3: memref<128x128xf32, #tpu.memory_space<vmem>>, %arg4: memref<16x128xf32, #tpu.memory_space<vmem>>) attributes {dimension_semantics = [#tpu.dimension_semantics<parallel>], iteration_bounds = array<i64: 1>, scalar_prefetch = 0 : i64, scratch_operands = 0 : i64, tpu.core_type = #tpu.core_type<tc>, window_params = [{transform_indices = @transform_0, window_bounds = array<i64: 16, 128>}, {pipeline_mode = #tpu.pipeline_mode<synchronous>, transform_indices = @transform_1, window_bounds = array<i64: 1, 128>}, {pipeline_mode = #tpu.pipeline_mode<synchronous>, transform_indices = @transform_2, window_bounds = array<i64: 128, 128>}, {transform_indices = @transform_3, window_bounds = array<i64: 16, 128>}]} {
    %c0 = arith.constant 0 : index
    %c0_0 = arith.constant 0 : index
    %0 = vector.load %arg1[%c0, %c0_0] : memref<16x128xf32, #tpu.memory_space<vmem>>, vector<16x128xf32>
    %1 = arith.mulf %0, %0 : vector<16x128xf32>
    %c0_1 = arith.constant 0 : index
    %c0_2 = arith.constant 0 : index
    %2 = vector.load %arg3[%c0_1, %c0_2] : memref<128x128xf32, #tpu.memory_space<vmem>>, vector<128x128xf32>
    %cst = arith.constant dense<0.000000e+00> : vector<16x128xf32>
    %3 = tpu.matmul %1, %2, %cst {dimension_numbers = #tpu.dot_dimension_numbers<[1], [0], [0], [1], [0, 0, 1, 1], [], []>, precision = #tpu.contract_precision<fp32>} : vector<16x128xf32>, vector<128x128xf32>, vector<16x128xf32> -> vector<16x128xf32>
    %cst_3 = arith.constant 9.99999993E-9 : f32
    %4 = vector.broadcast %cst_3 : f32 to vector<16x128xf32>
    %5 = arith.addf %3, %4 : vector<16x128xf32>
    %6 = math.rsqrt %5 : vector<16x128xf32>
    %7 = arith.mulf %0, %6 : vector<16x128xf32>
    %c0_4 = arith.constant 0 : index
    %c0_5 = arith.constant 0 : index
    %8 = vector.load %arg2[%c0_4, %c0_5] : memref<1x128xf32, #tpu.memory_space<vmem>>, vector<1x128xf32>
    %9 = vector.broadcast %8 : vector<1x128xf32> to vector<16x128xf32>
    %10 = arith.mulf %7, %9 : vector<16x128xf32>
    %c0_6 = arith.constant 0 : index
    %c0_7 = arith.constant 0 : index
    %11 = vector.load %arg4[%c0_6, %c0_7] : memref<16x128xf32, #tpu.memory_space<vmem>>, vector<16x128xf32>
    tpu.vector_store %arg4[%c0_6, %c0_7], %10 {strides = array<i32>} : memref<16x128xf32, #tpu.memory_space<vmem>>, vector<16x128xf32>,
    return
  }
  func.func @transform_0(%arg0: i32) -> (i32, i32) {
    %c0_i32 = arith.constant 0 : i32
    %c0_i32_0 = arith.constant 0 : i32
    return %arg0, %c0_i32 : i32, i32
  }
  func.func @transform_1(%arg0: i32) -> (i32, i32) {
    %c0_i32 = arith.constant 0 : i32
    %c0_i32_0 = arith.constant 0 : i32
    %c0_i32_1 = arith.constant 0 : i32
    return %c0_i32, %c0_i32_0 : i32, i32
  }
  func.func @transform_2(%arg0: i32) -> (i32, i32) {
    %c0_i32 = arith.constant 0 : i32
    %c0_i32_0 = arith.constant 0 : i32
    %c0_i32_1 = arith.constant 0 : i32
    return %c0_i32, %c0_i32_0 : i32, i32
  }
  func.func @transform_3(%arg0: i32) -> (i32, i32) {
    %c0_i32 = arith.constant 0 : i32
    %c0_i32_0 = arith.constant 0 : i32
    return %arg0, %c0_i32 : i32, i32
  }
}

</mosaic_0001>

<bundles_post_ra>
// kernel: tpu_custom_call.1
= control target key start
LH: loop header
LB: loop body
LE: loop exit
PB: predicated region body
PF: predicated region fallthrough
CT: control target
= control target key end

     0   :  { %8 = vsyncpa [#allocation3], 0  ;;  %s1729_s0 = inlined_call_operand.hbm [shape: f32[16,128], index: 0, kind: input, shape index: {}]   ;;  %s1730_s1 = inlined_call_operand.vmem [shape: f32[1,128], index: 1, kind: input, shape index: {}]   ;;  %s1731_s2 = inlined_call_operand.hbm [shape: f32[128,128], index: 2, kind: input, shape index: {}]   ;;  %s1732_s3 = inlined_call_operand.hbm [shape: f32[16,128], index: 3, kind: output, shape index: {}]  }
   0x1   :  { %9 = vsyncpa [#allocation6], 0 }
   0x2   :  { %10 = vsyncpa [#allocation4], 0  ;;  %s1384_s12 = smov [#allocation2]   ;;  %s1312_s16 = scalar_lea.hbm %s1729_s0, 256 }
   0x3   :  { %s16_s13 = sshll.u32 %s1384_s12, 4  ;;  %p1313_p0 = scmp.ne.s32.totalorder %s1729_s0, %s1312_s16  ;;  %s17_s13 = int_to_ptr.vmem [resolvable:$true] %s16_s13 }
   0x4   :  { %p1316_p1 = scmp.lt.u32.totalorder %s1312_s16, %s1729_s0 }
   0x6   :  { %p1318_p2 = pnand %p1316_p1, %p1313_p0 }
   0x8   :  { %1321 = shalt.err (!%p1318_p2)
}
   0x9   :  { %s1322_s21 = scalar_lea.vmem %s17_s13, 256  ;;  %p1327_p4 = scmp.lt.s32.totalorder %s17_s13, %s17_s13 }
   0xa   :  { %p1323_p3 = scmp.ne.s32.totalorder %s17_s13, %s1322_s21  ;;  %p1328_p5 = scmp.lt.s32.totalorder %s1322_s21, %s1322_s21 }
   0xc   :  { %p1329_p6 = por %p1328_p5, %p1327_p4 }
   0xe   :  { %p1330_p7 = pnand %p1329_p6, %p1323_p3 }
  0x10   :  { %1333 = shalt.err (!%p1330_p7)
}
  0x11   :  { %s1385_s22 = smov 128   ;;  %s1386_s23 = smov 8  }
  0x12   :  { %22 = dma.hbm_to_vmem [thread:$0]  %s1729_s0, 256, %s17_s13, [#allocation3], %s1385_s22, %s1385_s22, %s1386_s23  }
  0x13   :  { %s1387_s26 = smov [#allocation5]   ;;  %s1334_s30 = scalar_lea.hbm %s1731_s2, 2048 }
  0x14   :  { %s30_s27 = sshll.u32 %s1387_s26, 4  ;;  %p1335_p8 = scmp.ne.s32.totalorder %s1731_s2, %s1334_s30  ;;  %s31_s27 = int_to_ptr.vmem [resolvable:$true] %s30_s27 }
  0x15   :  { %p1338_p9 = scmp.lt.u32.totalorder %s1334_s30, %s1731_s2 }
  0x17   :  { %p1340_p10 = pnand %p1338_p9, %p1335_p8 }
  0x19   :  { %1343 = shalt.err (!%p1340_p10)
}
  0x1a   :  { %s1344_s8 = scalar_lea.vmem %s31_s27, 2048  ;;  %p1349_p12 = scmp.lt.s32.totalorder %s31_s27, %s31_s27 }
  0x1b   :  { %p1345_p11 = scmp.ne.s32.totalorder %s31_s27, %s1344_s8  ;;  %p1350_p13 = scmp.lt.s32.totalorder %s1344_s8, %s1344_s8 }
  0x1d   :  { %p1351_p0 = por %p1350_p13, %p1349_p12 }
  0x1f   :  { %p1352_p1 = pnand %p1351_p0, %p1345_p11 }
  0x21   :  { %1355 = shalt.err (!%p1352_p1)
}
  0x22   :  { %36 = dma.hbm_to_vmem [thread:$0]  %s1731_s2, 2048, %s31_s27, [#allocation6], %s1385_s22, %s1385_s22, %s1386_s23  }
  0x23   :  { %1378 = dma.done.wait [#allocation3], 256  }
  0x24   :  { %1379 = vsyncadd [#allocation3], 4294967040 }
  0x25   :  { %1380 = dma.done.wait [#allocation6], 2048  }
  0x26   :  { %1381 = vsyncadd [#allocation6], 4294965248  ;;  %v47_v0 = vld [vmem:[#allocation5] sm:$0xff]  ;;  %v48_v1 = vld [vmem:[#allocation5 + $0x8] sm:$0xff]  ;;  %s1388_s11 = smov [#allocation7]  }
  0x27   :  { %v49_v2 = vld [vmem:[#allocation5 + $0x10] sm:$0xff]  ;;  %v64_v3 = vand.u32 4294901760, %v47_v0  ;;  %v67_v4 = vand.u32 4294901760, %v48_v1  ;;  %v50_v5 = vld [vmem:[#allocation5 + $0x18] sm:$0xff]  ;;  %v1439_v7 = vld [vmem:[#allocation5 + $0x20] sm:$0xff]  ;;  %s767_s12 = sshll.u32 %s1388_s11, 4  ;;  %s768_s12 = int_to_ptr.vmem [resolvable:$true] %s767_s12 }
  0x28   :  { %v70_v6 = vand.u32 4294901760, %v49_v2  ;;  %v1441_v8 = vld [vmem:[#allocation5 + $0x28] sm:$0xff]  ;;  %v73_v9 = vand.u32 4294901760, %v50_v5  ;;  %v76_v11 = vand.u32 4294901760, %v1439_v7  ;;  %v1449_v14 = vld [vmem:[#allocation5 + $0x30] sm:$0xff]  ;;  %v1451_v15 = vld [vmem:[#allocation5 + $0x38] sm:$0xff]  ;;  %p1361_p3 = scmp.lt.s32.totalorder %s768_s12, %s768_s12 }
  0x29   :  { %v1443_v10 = vpack.c.bf16 %v67_v4, %v64_v3  ;;  %v79_v12 = vand.u32 4294901760, %v1441_v8  ;;  %v1455_v16 = vld [vmem:[#allocation2] sm:$0xff]  ;;  %v82_v19 = vand.u32 4294901760, %v1449_v14  ;;  %v85_v20 = vand.u32 4294901760, %v1451_v15  ;;  %v1471_v21 = vld [vmem:[#allocation5 + $0x40] sm:$0xff]  ;;  %v1473_v22 = vld [vmem:[#allocation5 + $0x48] sm:$0xff] }
  0x2a   :  { %v1447_v13 = vpack.c.bf16 %v73_v9, %v70_v6  ;;  %v45_v17 = vmul.f32 %v1455_v16, %v1455_v16  ;;  %v1482_v25 = vld [vmem:[#allocation2 + $0x8] sm:$0xff]  ;;  %v88_v27 = vand.u32 4294901760, %v1471_v21  ;;  %v91_v28 = vand.u32 4294901760, %v1473_v22  ;;  %v1494_v29 = vld [vmem:[#allocation5 + $0x50] sm:$0xff]  ;;  %v1518_v39 = vld [vmem:[#allocation5 + $0x60] sm:$0xff]  ;;  %s1356_s13 = scalar_lea.vmem %s768_s12, 256 }
  0x2b   :  { %1100 = vmatprep.subr.bf16.mxu1 %v1443_v10  ;;  %1196 = vmatprep.subr.bf16.mxu0 %v1443_v10  ;;  %v1467_v18 = vpack.c.bf16 %v79_v12, %v76_v11  ;;  %v1490_v26 = vpack.c.bf16 %v85_v20, %v82_v19  ;;  %v1496_v30 = vld [vmem:[#allocation5 + $0x58] sm:$0xff]  ;;  %v46_v32 = vmul.f32 %v1482_v25, %v1482_v25  ;;  %v94_v36 = vand.u32 4294901760, %v1494_v29  ;;  %v1520_v40 = vld [vmem:[#allocation5 + $0x68] sm:$0xff]  ;;  %v1526_v43 = vld [vmem:[#allocation5 + $0x70] sm:$0xff]  ;;  %p1357_p2 = scmp.ne.s32.totalorder %s768_s12, %s1356_s13  ;;  %p1362_p4 = scmp.lt.s32.totalorder %s1356_s13, %s1356_s13 }
  0x2c   :  { %1102 = vmatpush3.bf16.msra.mxu1 %v1443_v10  ;;  %1198 = vmatpush3.bf16.msra.mxu0 %v1443_v10  ;;  %v1475_v23 = vand.u32 4294901760, %v45_v17  ;;  %v1504_v34 = vsub.f32 %v47_v0, %v64_v3  ;;  %v1512_v35 = vpack.c.bf16 %v91_v28, %v88_v27  ;;  %v97_v37 = vand.u32 4294901760, %v1496_v30  ;;  %v1543_v50 = vld [vmem:[#allocation5 + $0x78] sm:$0xff] }
  0x2d   :  { %1104 = vmatprep.subr.bf16.mxu1 %v1447_v13  ;;  %1200 = vmatprep.subr.bf16.mxu0 %v1447_v13  ;;  %v1516_v38 = vsub.f32 %v48_v1, %v67_v4  ;;  %v1522_v42 = vand.u32 4294901760, %v46_v32  ;;  %v1529_v45 = vsub.f32 %v49_v2, %v70_v6  ;;  %v1531_v46 = vsub.f32 %v50_v5, %v73_v9  ;;  %p1363_p5 = por %p1362_p4, %p1361_p3 }
  0x2e   :  { %v1480_v24 = vsub.f32 %v45_v17, %v1475_v23  ;;  %v167_v44 = vand.u32 4294901760, %v1504_v34  ;;  %v1539_v47 = vpack.c.bf16 %v97_v37, %v94_v36  ;;  %v100_v48 = vand.u32 4294901760, %v1518_v39 }
  0x2f   :  { %v103_v49 = vand.u32 4294901760, %v1520_v40  ;;  %v174_v51 = vand.u32 4294901760, %v1516_v38  ;;  %v106_v52 = vand.u32 4294901760, %v1526_v43  ;;  %v1548_v53 = vsub.f32 %v46_v32, %v1522_v42  ;;  %p1364_p6 = pnand %p1363_p5, %p1357_p2 }
  0x30   :  { %1106 = vmatpush3.bf16.msra.mxu1 %v1447_v13  ;;  %1202 = vmatpush3.bf16.msra.mxu0 %v1447_v13  ;;  %v146_v31 = vand.u32 4294901760, %v1480_v24  ;;  %v1553_v54 = vsub.f32 %v1439_v7, %v76_v11  ;;  %v109_v55 = vand.u32 4294901760, %v1543_v50  ;;  %v168_v56 = vsub.f32 %v1504_v34, %v167_v44 }
  0x31   :  { %1108 = vmatprep.subr.bf16.mxu1 %v1467_v18  ;;  %1204 = vmatprep.subr.bf16.mxu0 %v1467_v18  ;;  %v181_v57 = vand.u32 4294901760, %v1529_v45  ;;  %v188_v58 = vand.u32 4294901760, %v1531_v46  ;;  %v1567_v59 = vpack.c.bf16 %v103_v49, %v100_v48  ;;  %v175_v60 = vsub.f32 %v1516_v38, %v174_v51 }
  0x32   :  { %v147_v33 = vsub.f32 %v1480_v24, %v146_v31  ;;  %1026 = vmatprep.mubr.f32.mxu0 %v146_v31  ;;  %v1573_v61 = vsub.f32 %v1441_v8, %v79_v12  ;;  %v156_v62 = vand.u32 4294901760, %v1548_v53  ;;  %v195_v63 = vand.u32 4294901760, %v1553_v54 }
  0x33   :  { %v1583_v0 = vpack.c.bf16 %v109_v55, %v106_v52  ;;  %v169_v1 = vand.u32 4294901760, %v168_v56  ;;  %v182_v2 = vsub.f32 %v1529_v45, %v181_v57  ;;  %v189_v3 = vsub.f32 %v1531_v46, %v188_v58 }
  0x34   :  { %1110 = vmatpush3.bf16.msra.mxu1 %v1467_v18  ;;  %1206 = vmatpush3.bf16.msra.mxu0 %v1467_v18  ;;  %v148_v41 = vand.u32 4294901760, %v147_v33  ;;  %v176_v4 = vand.u32 4294901760, %v175_v60  ;;  %v202_v5 = vand.u32 4294901760, %v1573_v61  ;;  %v1593_v6 = vsub.f32 %v1449_v14, %v82_v19 }
  0x35   :  { %1112 = vmatprep.subr.bf16.mxu1 %v1490_v26  ;;  %1208 = vmatprep.subr.bf16.mxu0 %v1490_v26  ;;  %v1598_v7 = vsub.f32 %v1451_v15, %v85_v20  ;;  %v1227_v8 = vpack.c.bf16 %v174_v51, %v167_v44  ;;  %v157_v9 = vsub.f32 %v1548_v53, %v156_v62  ;;  %v183_v12 = vand.u32 4294901760, %v182_v2 }
  0x36   :  { %921 = vmatprep.mubr.f32.mxu1 %v148_v41  ;;  %v196_v11 = vsub.f32 %v1553_v54, %v195_v63  ;;  %v190_v17 = vand.u32 4294901760, %v189_v3  ;;  %v1607_v14 = vsub.f32 %v1471_v21, %v88_v27  ;;  %v1612_v15 = vsub.f32 %v1473_v22, %v91_v28 }
  0x37   :  { %v1131_v19 = vpack.c.bf16 %v176_v4, %v169_v1  ;;  %v203_v20 = vsub.f32 %v1573_v61, %v202_v5  ;;  %v209_v31 = vand.u32 4294901760, %v1593_v6  ;;  %v216_v32 = vand.u32 4294901760, %v1598_v7 }
  0x38   :  { %1114 = vmatpush3.bf16.msra.mxu1 %v1490_v26  ;;  %1210 = vmatpush3.bf16.msra.mxu0 %v1490_v26  ;;  %v158_v33 = vand.u32 4294901760, %v157_v9  ;;  %v1231_v41 = vpack.c.bf16 %v188_v58, %v181_v57  ;;  %v197_v21 = vand.u32 4294901760, %v196_v11  ;;  %v223_v22 = vand.u32 4294901760, %v1607_v14 }
  0x39   :  { %1116 = vmatprep.subr.bf16.mxu1 %v1512_v35  ;;  %1212 = vmatprep.subr.bf16.mxu0 %v1512_v35  ;;  %v230_v27 = vand.u32 4294901760, %v1612_v15  ;;  %v1626_v28 = vsub.f32 %v1494_v29, %v94_v36  ;;  %v1631_v44 = vsub.f32 %v1496_v30, %v97_v37  ;;  %v1135_v51 = vpack.c.bf16 %v190_v17, %v183_v12 }
  0x3a   :  { %v204_v56 = vand.u32 4294901760, %v203_v20  ;;  %v210_v57 = vsub.f32 %v1593_v6, %v209_v31  ;;  %v217_v58 = vsub.f32 %v1598_v7, %v216_v32  ;;  %v1235_v60 = vpack.c.bf16 %v202_v5, %v195_v63 }
  0x3b   :  { %v1638_v29 = vsub.f32 %v1518_v39, %v100_v48  ;;  %v224_v30 = vsub.f32 %v1607_v14, %v223_v22  ;;  %v231_v36 = vsub.f32 %v1612_v15, %v230_v27  ;;  %v237_v37 = vand.u32 4294901760, %v1626_v28 }
  0x3c   :  { %1118 = vmatpush3.bf16.msra.mxu1 %v1512_v35  ;;  %1214 = vmatpush3.bf16.msra.mxu0 %v1512_v35  ;;  %v244_v1 = vand.u32 4294901760, %v1631_v44  ;;  %v1139_v2 = vpack.c.bf16 %v204_v56, %v197_v21  ;;  %v218_v63 = vand.u32 4294901760, %v217_v58  ;;  %v1647_v39 = vsub.f32 %v1520_v40, %v103_v49 }
  0x3d   :  { %1120 = vmatprep.subr.bf16.mxu1 %v1539_v47  ;;  %1216 = vmatprep.subr.bf16.mxu0 %v1539_v47  ;;  %v1239_v48 = vpack.c.bf16 %v216_v32, %v209_v31  ;;  %v251_v3 = vand.u32 4294901760, %v1638_v29  ;;  %v225_v4 = vand.u32 4294901760, %v224_v30  ;;  %v232_v5 = vand.u32 4294901760, %v231_v36 }
  0x3e   :  { %v245_v9 = vsub.f32 %v1631_v44, %v244_v1  ;;  %v258_v40 = vand.u32 4294901760, %v1647_v39  ;;  %v1658_v49 = vsub.f32 %v1526_v43, %v106_v52  ;;  %v1663_v12 = vsub.f32 %v1543_v50, %v109_v55 }
  0x3f   :  { %v1243_v17 = vpack.c.bf16 %v230_v27, %v223_v22  ;;  %v252_v31 = vsub.f32 %v1638_v29, %v251_v3  ;;  %v1147_v32 = vpack.c.bf16 %v232_v5, %v225_v4  ;;  %v1247_v50 = vpack.c.bf16 %v244_v1, %v237_v37 }
  0x40   :  { %1122 = vmatpush3.bf16.msra.mxu1 %v1539_v47  ;;  %1218 = vmatpush3.bf16.msra.mxu0 %v1539_v47  ;;  %v246_v20 = vand.u32 4294901760, %v245_v9  ;;  %v265_v43 = vand.u32 4294901760, %v1658_v49  ;;  %v272_v52 = vand.u32 4294901760, %v1663_v12  ;;  %v1251_v56 = vpack.c.bf16 %v258_v40, %v251_v3 }
  0x41   :  { %1124 = vmatprep.subr.bf16.mxu1 %v1567_v59  ;;  %1220 = vmatprep.subr.bf16.mxu0 %v1567_v59  ;;  %v253_v55 = vand.u32 4294901760, %v252_v31  ;;  %v1163_v36 = vpack.c.bf16 %v1516_v38, %v1504_v34  ;;  %v1171_v34 = vpack.c.bf16 %v1573_v61, %v1553_v54  ;;  %v1175_v38 = vpack.c.bf16 %v1598_v7, %v1593_v6  ;;  %v780_v6 = vld [vmem:[%s1730_s1] ss:$0 sm:$0xff] }
  0x42   :  { %v266_v22 = vsub.f32 %v1658_v49, %v265_v43  ;;  %v273_v27 = vsub.f32 %v1663_v12, %v272_v52  ;;  %v1255_v30 = vpack.c.bf16 %v272_v52, %v265_v43 }
  0x44   :  { %1126 = vmatpush3.bf16.msra.mxu1 %v1567_v59  ;;  %1222 = vmatpush3.bf16.msra.mxu0 %v1567_v59  ;;  %v274_v58 = vand.u32 4294901760, %v273_v27 }
  0x45   :  { %1128 = vmatprep.subr.bf16.mxu1 %v1583_v0  ;;  %1224 = vmatprep.subr.bf16.mxu0 %v1583_v0 }
  0x48   :  { %1130 = vmatpush3.bf16.msra.mxu1 %v1583_v0  ;;  %1226 = vmatpush3.bf16.msra.mxu0 %v1583_v0 }
  0x49   :  { %1132 = vmatprep.subr.bf16.mxu1 %v1131_v19  ;;  %1228 = vmatprep.subr.bf16.mxu0 %v1227_v8 }
  0x4b   :  { %922 = vmatmul.mubr.f32.vlgmr.msra.gmra.mrb[0].mxu1 %v158_v33  ;;  %1027 = vmatmul.mubr.f32.vlgmr.msra.gmra.mrb[0].mxu0 %v156_v62  ;;  %v211_v62 = vand.u32 4294901760, %v210_v57  ;;  %v259_v33 = vsub.f32 %v1647_v39, %v258_v40  ;;  %v267_v57 = vand.u32 4294901760, %v266_v22 }
  0x4c   :  { %1134 = vmatpush3.bf16.msra.mxu1 %v1131_v19  ;;  %1230 = vmatpush3.bf16.msra.mxu0 %v1227_v8  ;;  %v238_v8 = vsub.f32 %v1626_v28, %v237_v37  ;;  %v1167_v37 = vpack.c.bf16 %v1531_v46, %v1529_v45 }
  0x4d   :  { %1136 = vmatprep.subr.bf16.mxu1 %v1135_v51  ;;  %1232 = vmatprep.subr.bf16.mxu0 %v1231_v41  ;;  %v1143_v11 = vpack.c.bf16 %v218_v63, %v211_v62  ;;  %v260_v21 = vand.u32 4294901760, %v259_v33 }
  0x4e   :  { %956 = vmatprep.mubr.f32.mxu1 %v1475_v23  ;;  %1061 = vmatprep.mubr.f32.mxu0 %v1475_v23  ;;  %v239_v19 = vand.u32 4294901760, %v238_v8 }
  0x50   :  { %1138 = vmatpush3.bf16.msra.mxu1 %v1135_v51  ;;  %1234 = vmatpush3.bf16.msra.mxu0 %v1231_v41  ;;  %v1151_v41 = vpack.c.bf16 %v246_v20, %v239_v19  ;;  %v1155_v51 = vpack.c.bf16 %v260_v21, %v253_v55 }
  0x51   :  { %1140 = vmatprep.subr.bf16.mxu1 %v1139_v2  ;;  %1236 = vmatprep.subr.bf16.mxu0 %v1235_v60 }
  0x54   :  { %1142 = vmatpush3.bf16.msra.mxu1 %v1139_v2  ;;  %1238 = vmatpush3.bf16.msra.mxu0 %v1235_v60  ;;  %v1159_v60 = vpack.c.bf16 %v274_v58, %v267_v57 }
  0x55   :  { %1144 = vmatprep.subr.bf16.mxu1 %v1143_v11  ;;  %1240 = vmatprep.subr.bf16.mxu0 %v1239_v48 }
  0x58   :  { %1146 = vmatpush3.bf16.msra.mxu1 %v1143_v11  ;;  %1242 = vmatpush3.bf16.msra.mxu0 %v1239_v48 }
  0x59   :  { %1148 = vmatprep.subr.bf16.mxu1 %v1147_v32  ;;  %1244 = vmatprep.subr.bf16.mxu0 %v1243_v17 }
  0x5c   :  { %1150 = vmatpush3.bf16.msra.mxu1 %v1147_v32  ;;  %1246 = vmatpush3.bf16.msra.mxu0 %v1243_v17 }
  0x5d   :  { %1152 = vmatprep.subr.bf16.mxu1 %v1151_v41  ;;  %1248 = vmatprep.subr.bf16.mxu0 %v1247_v50 }
  0x60   :  { %1154 = vmatpush3.bf16.msra.mxu1 %v1151_v41  ;;  %1250 = vmatpush3.bf16.msra.mxu0 %v1247_v50 }
  0x61   :  { %1156 = vmatprep.subr.bf16.mxu1 %v1155_v51  ;;  %1252 = vmatprep.subr.bf16.mxu0 %v1251_v56 }
  0x64   :  { %1158 = vmatpush3.bf16.msra.mxu1 %v1155_v51  ;;  %1254 = vmatpush3.bf16.msra.mxu0 %v1251_v56 }
  0x65   :  { %1160 = vmatprep.subr.bf16.mxu1 %v1159_v60  ;;  %1256 = vmatprep.subr.bf16.mxu0 %v1255_v30 }
  0x68   :  { %1162 = vmatpush3.bf16.msra.mxu1 %v1159_v60  ;;  %1258 = vmatpush3.bf16.msra.mxu0 %v1255_v30 }
  0x69   :  { %1164 = vmatprep.subr.bf16.mxu1 %v1163_v36  ;;  %1260 = vmatprep.subr.bf16.mxu0 %v1443_v10 }
  0x6b   :  { %957 = vmatmul.mubr.f32.vlgmr.msra.gmra.mrb[0].mxu1 %v1522_v42  ;;  %1062 = vmatmul.mubr.f32.vlgmr.msra.gmra.mrb[0].mxu0 %v1522_v42 }
  0x6c   :  { %1166 = vmatpush3.bf16.msra.mxu1 %v1163_v36  ;;  %1262 = vmatpush3.bf16.msra.mxu0 %v1443_v10  ;;  %v1179_v10 = vpack.c.bf16 %v1612_v15, %v1607_v14 }
  0x6d   :  { %1168 = vmatprep.subr.bf16.mxu1 %v1167_v37  ;;  %1264 = vmatprep.subr.bf16.mxu0 %v1447_v13 }
  0x6e   :  { %991 = vmatprep.mubr.f32.mxu1 %v1480_v24  ;;  %1096 = vmatprep.mubr.f32.mxu0 %v1475_v23  ;;  %v1191_v23 = vpack.c.bf16 %v1663_v12, %v1658_v49 }
  0x70   :  { %1170 = vmatpush3.bf16.msra.mxu1 %v1167_v37  ;;  %1266 = vmatpush3.bf16.msra.mxu0 %v1447_v13  ;;  %v1183_v13 = vpack.c.bf16 %v1631_v44, %v1626_v28 }
  0x71   :  { %1172 = vmatprep.subr.bf16.mxu1 %v1171_v34  ;;  %1268 = vmatprep.subr.bf16.mxu0 %v1467_v18 }
  0x74   :  { %1174 = vmatpush3.bf16.msra.mxu1 %v1171_v34  ;;  %1270 = vmatpush3.bf16.msra.mxu0 %v1467_v18  ;;  %v1187_v18 = vpack.c.bf16 %v1647_v39, %v1638_v29 }
  0x75   :  { %1176 = vmatprep.subr.bf16.mxu1 %v1175_v38  ;;  %1272 = vmatprep.subr.bf16.mxu0 %v1490_v26 }
  0x78   :  { %1178 = vmatpush3.bf16.msra.mxu1 %v1175_v38  ;;  %1274 = vmatpush3.bf16.msra.mxu0 %v1490_v26 }
  0x79   :  { %1180 = vmatprep.subr.bf16.mxu1 %v1179_v10  ;;  %1276 = vmatprep.subr.bf16.mxu0 %v1512_v35 }
  0x7c   :  { %1182 = vmatpush3.bf16.msra.mxu1 %v1179_v10  ;;  %1278 = vmatpush3.bf16.msra.mxu0 %v1512_v35 }
  0x7d   :  { %1184 = vmatprep.subr.bf16.mxu1 %v1183_v13  ;;  %1280 = vmatprep.subr.bf16.mxu0 %v1539_v47 }
  0x80   :  { %1186 = vmatpush3.bf16.msra.mxu1 %v1183_v13  ;;  %1282 = vmatpush3.bf16.msra.mxu0 %v1539_v47 }
  0x81   :  { %1188 = vmatprep.subr.bf16.mxu1 %v1187_v18  ;;  %1284 = vmatprep.subr.bf16.mxu0 %v1567_v59 }
  0x84   :  { %1190 = vmatpush3.bf16.msra.mxu1 %v1187_v18  ;;  %1286 = vmatpush3.bf16.msra.mxu0 %v1567_v59 }
  0x85   :  { %1192 = vmatprep.subr.bf16.mxu1 %v1191_v23  ;;  %1288 = vmatprep.subr.bf16.mxu0 %v1583_v0 }
  0x88   :  { %1194 = vmatpush3.bf16.msra.mxu1 %v1191_v23  ;;  %1290 = vmatpush3.bf16.msra.mxu0 %v1583_v0 }
  0x8b   :  { %992 = vmatmul.mubr.f32.vlgmr.msra.gmra.mrb[0].mxu1 %v1548_v53  ;;  %1097 = vmatmul.mubr.f32.vlgmr.msra.gmra.mrb[0].mxu0 %v1522_v42 }
 0x15e   :  { %v993_v24 = vpop.f32.mrb[0].mxu1  ;;  %v1098_v26 = vpop.f32.mrb[0].mxu0 }
 0x15f   :  { %v1291_v35 = vadd.f32 1e-08, %v993_v24  ;;  %v421_v45 = vpop.f32.mrb[1].mxu1  ;;  %v737_v46 = vpop.f32.mrb[1].mxu0 }
 0x160   :  { %v1293_v47 = vadd.f32 1e-08, %v421_v45 }
 0x161   :  { %v1292_v54 = vadd.f32 %v1291_v35, %v1098_v26 }
 0x162   :  { %v1294_v61 = vadd.f32 %v1293_v47, %v737_v46 }
 0x163   :  { %1308 = vrsqrt.f32 %v1292_v54 }
 0x164   :  { %1310 = vrsqrt.f32 %v1294_v61 }
 0x16d   :  { %v1309_v59 = vpop.eup %1308 }
 0x16e   :  { %v1311_v0 = vpop.eup %1310  ;;  %v750_v53 = vmul.f32 %v1309_v59, %v1482_v25 }
 0x16f   :  { %v749_v42 = vmul.f32 %v1311_v0, %v1455_v16 }
 0x170   :  { %v759_v7 = vmul.f32 %v780_v6, %v750_v53 }
 0x171   :  { %v758_v14 = vmul.f32 %v780_v6, %v749_v42 }
 0x172   :  { %761 = vst [vmem:[#allocation7 + $0x8] sm:$0xff] %v759_v7 }
 0x173   :  { %760 = vst [vmem:[#allocation7] sm:$0xff] %v758_v14 }
 0x174   :  { %1367 = shalt.err (!%p1364_p6)
}
 0x175   :  { %s1368_s15 = scalar_lea.hbm %s1732_s3, 256 }
 0x176   :  { %p1369_p7 = scmp.ne.s32.totalorder %s1732_s3, %s1368_s15  ;;  %p1372_p8 = scmp.lt.u32.totalorder %s1368_s15, %s1732_s3 }
 0x178   :  { %p1374_p9 = pnand %p1372_p8, %p1369_p7 }
 0x17a   :  { %1377 = shalt.err (!%p1374_p9)
}
 0x17b   :  { %773 = dma.vmem_to_hbm [thread:$0]  %s768_s12, 256, %s1732_s3, [#allocation4], %s1385_s22, %s1385_s22, %s1386_s23  }
 0x17c   :  { %1382 = dma.done.wait [#allocation4], 256  }
 0x17d   :  { %1383 = vsyncadd [#allocation4], 4294967040 }
 0x17e   :  { %777 = vsyncpa [#allocation3], 1 }
 0x17f   :  { %778 = vsyncpa [#allocation6], 1 }
 0x180   :  { %779 = vsyncpa [#allocation4], 1 }

</bundles_post_ra>
